<compile_context>
chip_gen: v6e
topology: v6e:2x2x1
jax: 0.10.0
libtpu: 0.0.40
codegen_flags: <defaults>
</compile_context>

<pallas_src>
import numpy as np
import jax
import jax.numpy as jnp
from jax.experimental import pallas as pl
from jax.experimental.pallas import tpu as pltpu

HID = 128        # GCNConv-1 hidden width
ATT_HID = 64     # attention MLP hidden width


def _round_up(n, m):
    return ((n + m - 1) // m) * m


def _device_kind():
    try:
        return jax.devices()[0].device_kind.lower()
    except Exception:
        return ""


def _vmem_limit_bytes():
    kind = _device_kind()
    if "v5" in kind or "v6" in kind:
        return 96 * 1024 * 1024          # 128 MiB physical VMEM
    return 48 * 1024 * 1024              # v7x (64 MiB physical) / unknown: stay low


def _default_tile(max_graph_nodes):
    kind = _device_kind()
    base = 512 if ("v5" in kind or "v6" in kind) else 256
    return max(128, min(base, _round_up(max_graph_nodes, 128)))


# ---------------------------------------------------------------------------
# Kernel 1: K-tiled  H1 = relu(A_hat @ XW1 + b1); epilogue writes H1@W2, H1@Wr.
#   grid = (row_blocks, k_blocks); column window per row block via scalar prefetch.
# ---------------------------------------------------------------------------
def _gcn1_kernel(cbs_ref, a_ref, xw1_ref, b1_ref, wcat_ref,
                 hw2_ref, hr_ref, acc_ref):
    k = pl.program_id(1)

    @pl.when(k == 0)
    def _():
        acc_ref[...] = jnp.zeros_like(acc_ref)

    acc_ref[...] += jnp.dot(a_ref[...], xw1_ref[...],
                            preferred_element_type=jnp.float32)

    @pl.when(k == pl.num_programs(1) - 1)
    def _():
        e = hw2_ref.shape[1]
        h1 = jnp.maximum(acc_ref[...] + b1_ref[...], 0.0)
        # dropout(p=0.5) in eval mode == identity
        hw = jnp.dot(h1.astype(wcat_ref.dtype), wcat_ref[...],
                     preferred_element_type=jnp.float32)
        hw2_ref[...] = hw[:, :e].astype(hw2_ref.dtype)
        hr_ref[...] = hw[:, e:].astype(hr_ref.dtype)


# ---------------------------------------------------------------------------
# Kernel 2: K-tiled  H2 = relu(A_hat @ HW2 + b2 + HR + br)
#           attn = sigmoid(relu(H2 @ Wa1 + ba1) @ Wa2 + ba2)
#           per-row-block pooled partial = pool_cols @ (H2 * attn)   -> (1, G, E)
# ---------------------------------------------------------------------------
def _gcn2_pool_kernel(cbs_ref, a_ref, hw2_ref, hr_ref, pool_ref,
                      b2_ref, br_ref, wa1_ref, ba1_ref, wa2_ref, ba2_ref,
                      out_ref, acc_ref):
    k = pl.program_id(1)
    f32 = jnp.float32

    @pl.when(k == 0)
    def _():
        acc_ref[...] = jnp.zeros_like(acc_ref)

    acc_ref[...] += jnp.dot(a_ref[...], hw2_ref[...],
                            preferred_element_type=f32)

    @pl.when(k == pl.num_programs(1) - 1)
    def _():
        h2 = acc_ref[...] + b2_ref[...] + hr_ref[...].astype(f32) + br_ref[...]
        h2 = jnp.maximum(h2, 0.0)
        # attention MLP: bf16 MXU operands, f32 accumulation (v5e-friendly)
        a_hid = jnp.dot(h2.astype(wa1_ref.dtype), wa1_ref[...],
                        preferred_element_type=f32) + ba1_ref[...]
        a_hid = jnp.maximum(a_hid, 0.0)
        # Linear(64 -> 1): lane-reduce instead of a lane-sparse [T, 1] matmul output
        logits = jnp.sum(a_hid * wa2_ref[...], axis=-1, keepdims=True) + ba2_ref[...]
        attn = jax.nn.sigmoid(logits)
        part = jnp.dot(pool_ref[...], h2 * attn, preferred_element_type=f32)
        out_ref[...] = part[None].astype(out_ref.dtype)


def malware_dml_forward(x, a_hat, pool, params, *, node_counts=None, tile=None):
    """Forward pass. x:[N,F], a_hat:[N,N], pool:[G,N] -> [G,E] (L2-normalized).

    node_counts: optional static per-graph node counts (nodes assumed ordered
    graph-by-graph, PyG batch convention). Enables block-diagonal tiling that
    skips the all-zero cross-graph tiles of A_hat. If None, treated as one graph.
    """
    n, _f = x.shape
    g = pool.shape[0]
    e = params["w2"].shape[1]

    if node_counts is None:
        node_counts = (n,)
    node_counts = tuple(int(c) for c in node_counts)
    assert sum(node_counts) == n

    t = int(tile) if tile is not None else _default_tile(max(node_counts))
    assert t % 128 == 0

    # --- per-graph T-aligned layout (block-diagonal tiling) ---
    slots = [_round_up(c, t) for c in node_counts]
    offs = np.concatenate([[0], np.cumsum(slots)])[:-1].astype(np.int64)
    n_lay = int(np.sum(slots))
    nb_k = max(slots) // t                               # column-window blocks per row blk
    n_all = max(n_lay, int(offs[-1]) + nb_k * t)         # every column window fits
    nb_rows = n_all // t

    # new node index of each original node (graph-contiguous, slot-padded)
    idx_np = np.concatenate(
        [offs[gi] + np.arange(c) for gi, c in enumerate(node_counts)]).astype(np.int32)
    idx = jnp.asarray(idx_np)

    # per-row-block column-window start (in units of t blocks), scalar-prefetched
    cbs_np = np.zeros((nb_rows,), np.int32)
    for gi in range(len(node_counts)):
        r0 = int(offs[gi]) // t
        r1 = int(offs[gi] + slots[gi]) // t
        cbs_np[r0:r1] = int(offs[gi]) // t
    cbs_np = np.minimum(cbs_np, n_all // t - nb_k)       # safety clamp for pad blocks
    col_start_blk = jnp.asarray(cbs_np)

    bf16, f32 = jnp.bfloat16, jnp.float32

    # scatter inputs into the padded layout; pad rows/cols are zero so they never
    # contribute to the output (zero adjacency columns, zero pool weights).
    a_hat_p = jnp.zeros((n_all, n_all), f32).at[idx[:, None], idx[None, :]].set(
        a_hat.astype(f32)).astype(bf16)
    x_p = jnp.zeros((n_all, x.shape[1]), f32).at[idx].set(x.astype(f32))
    pool_p = jnp.zeros((g, n_all), f32).at[:, idx].set(pool.astype(f32))

    # Hoisted block-invariant projection: XW1 = X @ W1 (plain XLA, HBM resident).
    xw1 = jnp.dot(x_p.astype(bf16), params["w1"].astype(bf16),
                  preferred_element_type=f32).astype(bf16)

    b1 = params["b1"].astype(f32).reshape(1, HID)
    wcat = jnp.concatenate([params["w2"], params["wr"]], axis=1).astype(bf16)
    b2 = params["b2"].astype(f32).reshape(1, e)
    br = params["br"].astype(f32).reshape(1, e)
    wa1 = params["wa1"].astype(bf16)
    ba1 = params["ba1"].astype(f32).reshape(1, ATT_HID)
    wa2 = params["wa2"].astype(f32).reshape(1, ATT_HID)
    ba2 = params["ba2"].astype(f32).reshape(1, 1)

    cparams = pltpu.CompilerParams(
        dimension_semantics=("parallel", "arbitrary"),   # row blocks parallel (v7x 2 TCs)
        vmem_limit_bytes=_vmem_limit_bytes(),
    )
    steps = nb_rows * nb_k

    # ---- kernel 1: H1 = relu(A_hat @ XW1 + b1); outputs H1@W2 and H1@Wr ----
    cost1 = pl.CostEstimate(
        flops=2 * steps * t * t * HID + 2 * n_all * HID * 2 * e,
        transcendentals=0,
        bytes_accessed=2 * steps * t * (t + HID) + 2 * HID * 2 * e + 4 * n_all * e,
    )
    hw2, hr = pl.pallas_call(
        _gcn1_kernel,
        out_shape=(jax.ShapeDtypeStruct((n_all, e), bf16),
                   jax.ShapeDtypeStruct((n_all, e), bf16)),
        grid_spec=pltpu.PrefetchScalarGridSpec(
            num_scalar_prefetch=1,
            grid=(nb_rows, nb_k),
            in_specs=[
                pl.BlockSpec((t, t), lambda i, k, cbs: (i, cbs[i] + k)),    # A_hat tile
                pl.BlockSpec((t, HID), lambda i, k, cbs: (cbs[i] + k, 0)),  # XW1 stream
                pl.BlockSpec((1, HID), lambda i, k, cbs: (0, 0)),           # b1
                pl.BlockSpec((HID, 2 * e), lambda i, k, cbs: (0, 0)),       # [W2 | Wr]
            ],
            out_specs=[
                pl.BlockSpec((t, e), lambda i, k, cbs: (i, 0)),             # H1 @ W2
                pl.BlockSpec((t, e), lambda i, k, cbs: (i, 0)),             # H1 @ Wr
            ],
            scratch_shapes=[pltpu.VMEM((t, HID), f32)],
        ),
        compiler_params=cparams,
        cost_estimate=cost1,
    )(col_start_blk, a_hat_p, xw1, b1, wcat)

    # ---- kernel 2: GCN-2 propagation + residual + attention + pooled partials ----
    cost2 = pl.CostEstimate(
        flops=2 * steps * t * t * e + 2 * n_all * (e * ATT_HID + g * e),
        transcendentals=2 * n_all,
        bytes_accessed=2 * steps * t * (t + e) + 2 * n_all * e
                       + 4 * g * n_all + 4 * nb_rows * g * e,
    )
    partials = pl.pallas_call(
        _gcn2_pool_kernel,
        out_shape=jax.ShapeDtypeStruct((nb_rows, g, e), f32),
        grid_spec=pltpu.PrefetchScalarGridSpec(
            num_scalar_prefetch=1,
            grid=(nb_rows, nb_k),
            in_specs=[
                pl.BlockSpec((t, t), lambda i, k, cbs: (i, cbs[i] + k)),    # A_hat tile
                pl.BlockSpec((t, e), lambda i, k, cbs: (cbs[i] + k, 0)),    # HW2 stream
                pl.BlockSpec((t, e), lambda i, k, cbs: (i, 0)),             # HR row block
                pl.BlockSpec((g, t), lambda i, k, cbs: (0, i)),             # pool columns
                pl.BlockSpec((1, e), lambda i, k, cbs: (0, 0)),             # b2
                pl.BlockSpec((1, e), lambda i, k, cbs: (0, 0)),             # br
                pl.BlockSpec((e, ATT_HID), lambda i, k, cbs: (0, 0)),       # Wa1
                pl.BlockSpec((1, ATT_HID), lambda i, k, cbs: (0, 0)),       # ba1
                pl.BlockSpec((1, ATT_HID), lambda i, k, cbs: (0, 0)),       # Wa2 ([1,64])
                pl.BlockSpec((1, 1), lambda i, k, cbs: (0, 0)),             # ba2
            ],
            out_specs=pl.BlockSpec((1, g, e), lambda i, k, cbs: (i, 0, 0)),
            scratch_shapes=[pltpu.VMEM((t, e), f32)],
        ),
        compiler_params=cparams,
        cost_estimate=cost2,
    )(col_start_blk, a_hat_p, hw2, hr, pool_p, b2, br, wa1, ba1, wa2, ba2)

    # Tiny XLA epilogue: reduce per-block pooled partials and L2-normalize
    # (matches F.normalize(p=2, dim=1, eps=1e-12)).
    emb = jnp.sum(partials, axis=0)
    norm = jnp.sqrt(jnp.sum(emb * emb, axis=-1, keepdims=True))
    return emb / jnp.maximum(norm, 1e-12)


# ---------------------------------------------------------------------------
# Pure-JAX reference (f32) + graph preprocessing helpers
# ---------------------------------------------------------------------------
def malware_dml_reference(x, a_hat, pool, params):
    h1 = jnp.maximum(a_hat @ (x @ params["w1"]) + params["b1"], 0.0)
    h2 = a_hat @ (h1 @ params["w2"]) + params["b2"]
    h2 = h2 + h1 @ params["wr"] + params["br"]
    h2 = jnp.maximum(h2, 0.0)
    a_hid = jnp.maximum(h2 @ params["wa1"] + params["ba1"], 0.0)
    logits = jnp.sum(a_hid * params["wa2"], axis=-1, keepdims=True) + params["ba2"]
    attn = jax.nn.sigmoid(logits)
    emb = pool @ (h2 * attn)
    norm = jnp.sqrt(jnp.sum(emb * emb, axis=-1, keepdims=True))
    return emb / jnp.maximum(norm, 1e-12)


def build_gcn_adj(edge_index, num_nodes):
    """Dense D^-1/2 (A + I) D^-1/2 with GCNConv conventions (aggregate at dst)."""
    src = edge_index[0]
    dst = edge_index[1]
    loop = jnp.arange(num_nodes, dtype=src.dtype)
    src = jnp.concatenate([src, loop])
    dst = jnp.concatenate([dst, loop])
    deg = jnp.zeros((num_nodes,), jnp.float32).at[dst].add(1.0)
    dinv = jnp.where(deg > 0, 1.0 / jnp.sqrt(deg), 0.0)
    norm = dinv[src] * dinv[dst]
    return jnp.zeros((num_nodes, num_nodes), jnp.float32).at[dst, src].add(norm)


def build_pool_matrix(batch, num_graphs, num_nodes):
    onehot = (batch[None, :] == jnp.arange(num_graphs)[:, None]).astype(jnp.float32)
    counts = jnp.maximum(jnp.sum(onehot, axis=1, keepdims=True), 1.0)
    return onehot / counts


def init_params(key, num_features, embedding_dim=256):
    ks = jax.random.split(key, 10)

    def glorot(k, shape):
        fan_in, fan_out = shape[0], shape[1]
        scale = jnp.sqrt(6.0 / (fan_in + fan_out))
        return jax.random.uniform(k, shape, jnp.float32, -scale, scale)

    return {
        "w1": glorot(ks[0], (num_features, HID)),
        "b1": jnp.zeros((1, HID), jnp.float32),
        "w2": glorot(ks[1], (HID, embedding_dim)),
        "b2": jnp.zeros((1, embedding_dim), jnp.float32),
        "wr": glorot(ks[2], (HID, embedding_dim)),
        "br": 0.01 * jax.random.normal(ks[3], (1, embedding_dim), jnp.float32),
        "wa1": glorot(ks[4], (embedding_dim, ATT_HID)),
        "ba1": 0.01 * jax.random.normal(ks[5], (1, ATT_HID), jnp.float32),
        "wa2": glorot(ks[6], (1, ATT_HID)),       # Linear(64, 1) weight, stored [1, 64]
        "ba2": 0.01 * jax.random.normal(ks[7], (1, 1), jnp.float32),
    }


if __name__ == "__main__":
    key = jax.random.PRNGKey(0)
    k_x, k_p = jax.random.split(key)

    num_nodes = 16          # N
    num_features = 32       # F
    embedding_dim = 256     # E
    num_graphs = 2          # G (batch of 2 graphs, 8 nodes each)

    x = jax.random.normal(k_x, (num_nodes, num_features), jnp.float32)

    # deterministic edges: a ring within each graph (both directions)
    edges = []
    for gi in range(num_graphs):
        base = gi * (num_nodes // num_graphs)
        npg = num_nodes // num_graphs
        for i in range(npg):
            a, b = base + i, base + (i + 1) % npg
            edges.append((a, b))
            edges.append((b, a))
    edge_index = jnp.array(edges, dtype=jnp.int32).T
    batch = jnp.repeat(jnp.arange(num_graphs, dtype=jnp.int32),
                       num_nodes // num_graphs)

    a_hat = build_gcn_adj(edge_index, num_nodes)
    pool = build_pool_matrix(batch, num_graphs, num_nodes)
    params = init_params(k_p, num_features, embedding_dim)

    out = malware_dml_forward(x, a_hat, pool, params,
                              node_counts=(8, 8))     # per-graph block-diagonal tiling
    out = jax.block_until_ready(out)

    assert out.shape == (num_graphs, embedding_dim)
    assert bool(jnp.all(jnp.isfinite(out)))
    # rows are L2-normalized
    norms = jnp.sqrt(jnp.sum(out * out, axis=1))
    assert bool(jnp.all(jnp.abs(norms - 1.0) < 1e-4))
    # directionally matches the f32 reference (bf16 MXU operands, f32 accumulation)
    ref = malware_dml_reference(x, a_hat, pool, params)
    cos = jnp.sum(out * ref, axis=1)
    assert bool(jnp.all(cos > 0.99)), cos
    print("KERNEL_OK")
</pallas_src>

<mosaic_0001>
module attributes {stable_mosaic.version = 11 : i64} {
  func.func @_gcn1_kernel(%arg0: i32, %arg1: i32, %arg2: memref<2xi32, #tpu.memory_space<smem>>, %arg3: memref<128x128xbf16, #tpu.memory_space<vmem>>, %arg4: memref<128x128xbf16, #tpu.memory_space<vmem>>, %arg5: memref<1x128xf32, #tpu.memory_space<vmem>>, %arg6: memref<128x512xbf16, #tpu.memory_space<vmem>>, %arg7: memref<128x256xbf16, #tpu.memory_space<vmem>>, %arg8: memref<128x256xbf16, #tpu.memory_space<vmem>>, %arg9: memref<128x128xf32, #tpu.memory_space<vmem>>) attributes {dimension_semantics = [#tpu.dimension_semantics<parallel>, #tpu.dimension_semantics<arbitrary>], iteration_bounds = array<i64: 2, 1>, scalar_prefetch = 1 : i64, scratch_operands = 1 : i64, tpu.core_type = #tpu.core_type<tc>, window_params = [{transform_indices = @transform_0, window_bounds = array<i64: 128, 128>}, {transform_indices = @transform_1, window_bounds = array<i64: 128, 128>}, {pipeline_mode = #tpu.pipeline_mode<synchronous>, transform_indices = @transform_2, window_bounds = array<i64: 1, 128>}, {pipeline_mode = #tpu.pipeline_mode<synchronous>, transform_indices = @transform_3, window_bounds = array<i64: 128, 512>}, {transform_indices = @transform_4, window_bounds = array<i64: 128, 256>}, {transform_indices = @transform_5, window_bounds = array<i64: 128, 256>}]} {
    %c0_i32 = arith.constant 0 : i32
    %0 = arith.cmpi eq, %arg1, %c0_i32 : i32
    %1 = arith.extui %0 : i1 to i32
    %c0_i32_0 = arith.constant 0 : i32
    %2 = arith.cmpi ne, %1, %c0_i32_0 : i32
    scf.if %2 {
      %cst_10 = arith.constant 0.000000e+00 : f32
      %12 = vector.broadcast %cst_10 : f32 to vector<128x128xf32>
      %c0_11 = arith.constant 0 : index
      %c0_12 = arith.constant 0 : index
      %13 = vector.load %arg9[%c0_11, %c0_12] : memref<128x128xf32, #tpu.memory_space<vmem>>, vector<128x128xf32>
      tpu.vector_store %arg9[%c0_11, %c0_12], %12 {strides = array<i32>} : memref<128x128xf32, #tpu.memory_space<vmem>>, vector<128x128xf32>,
    } else {
    }
    %c0 = arith.constant 0 : index
    %c0_1 = arith.constant 0 : index
    %3 = vector.load %arg9[%c0, %c0_1] : memref<128x128xf32, #tpu.memory_space<vmem>>, vector<128x128xf32>
    %c0_2 = arith.constant 0 : index
    %c0_3 = arith.constant 0 : index
    %4 = vector.load %arg3[%c0_2, %c0_3] : memref<128x128xbf16, #tpu.memory_space<vmem>>, vector<128x128xbf16>
    %c0_4 = arith.constant 0 : index
    %c0_5 = arith.constant 0 : index
    %5 = vector.load %arg4[%c0_4, %c0_5] : memref<128x128xbf16, #tpu.memory_space<vmem>>, vector<128x128xbf16>
    %cst = arith.constant dense<0.000000e+00> : vector<128x128xf32>
    %6 = tpu.matmul %4, %5, %cst {dimension_numbers = #tpu.dot_dimension_numbers<[1], [0], [0], [1], [0, 0, 1, 1], [], []>} : vector<128x128xbf16>, vector<128x128xbf16>, vector<128x128xf32> -> vector<128x128xf32>
    %7 = arith.addf %3, %6 : vector<128x128xf32>
    %c0_6 = arith.constant 0 : index
    %c0_7 = arith.constant 0 : index
    %8 = vector.load %arg9[%c0_6, %c0_7] : memref<128x128xf32, #tpu.memory_space<vmem>>, vector<128x128xf32>
    tpu.vector_store %arg9[%c0_6, %c0_7], %7 {strides = array<i32>} : memref<128x128xf32, #tpu.memory_space<vmem>>, vector<128x128xf32>,
    %c0_i32_8 = arith.constant 0 : i32
    %9 = arith.cmpi eq, %arg1, %c0_i32_8 : i32
    %10 = arith.extui %9 : i1 to i32
    %c0_i32_9 = arith.constant 0 : i32
    %11 = arith.cmpi ne, %10, %c0_i32_9 : i32
    scf.if %11 {
      %c0_10 = arith.constant 0 : index
      %c0_11 = arith.constant 0 : index
      %12 = vector.load %arg9[%c0_10, %c0_11] : memref<128x128xf32, #tpu.memory_space<vmem>>, vector<128x128xf32>
      %c0_12 = arith.constant 0 : index
      %c0_13 = arith.constant 0 : index
      %13 = vector.load %arg5[%c0_12, %c0_13] : memref<1x128xf32, #tpu.memory_space<vmem>>, vector<1x128xf32>
      %14 = vector.broadcast %13 : vector<1x128xf32> to vector<128x128xf32>
      %15 = arith.addf %12, %14 : vector<128x128xf32>
      %cst_14 = arith.constant 0.000000e+00 : f32
      %16 = vector.broadcast %cst_14 : f32 to vector<128x128xf32>
      %17 = arith.maximumf %15, %16 : vector<128x128xf32>
      %18 = arith.truncf %17 : vector<128x128xf32> to vector<128x128xbf16>
      %c0_15 = arith.constant 0 : index
      %c0_16 = arith.constant 0 : index
      %19 = vector.load %arg6[%c0_15, %c0_16] : memref<128x512xbf16, #tpu.memory_space<vmem>>, vector<128x512xbf16>
      %cst_17 = arith.constant dense<0.000000e+00> : vector<128x512xf32>
      %20 = tpu.matmul %18, %19, %cst_17 {dimension_numbers = #tpu.dot_dimension_numbers<[1], [0], [0], [1], [0, 0, 1, 1], [], []>} : vector<128x128xbf16>, vector<128x512xbf16>, vector<128x512xf32> -> vector<128x512xf32>
      %21 = vector.extract_strided_slice %20 {offsets = [0, 0], sizes = [128, 256], strides = [1, 1]} : vector<128x512xf32> to vector<128x256xf32>
      %22 = arith.truncf %21 : vector<128x256xf32> to vector<128x256xbf16>
      %c0_18 = arith.constant 0 : index
      %c0_19 = arith.constant 0 : index
      %23 = vector.load %arg7[%c0_18, %c0_19] : memref<128x256xbf16, #tpu.memory_space<vmem>>, vector<128x256xbf16>
      tpu.vector_store %arg7[%c0_18, %c0_19], %22 {strides = array<i32>} : memref<128x256xbf16, #tpu.memory_space<vmem>>, vector<128x256xbf16>,
      %24 = vector.extract_strided_slice %20 {offsets = [0, 256], sizes = [128, 256], strides = [1, 1]} : vector<128x512xf32> to vector<128x256xf32>
      %25 = arith.truncf %24 : vector<128x256xf32> to vector<128x256xbf16>
      %c0_20 = arith.constant 0 : index
      %c0_21 = arith.constant 0 : index
      %26 = vector.load %arg8[%c0_20, %c0_21] : memref<128x256xbf16, #tpu.memory_space<vmem>>, vector<128x256xbf16>
      tpu.vector_store %arg8[%c0_20, %c0_21], %25 {strides = array<i32>} : memref<128x256xbf16, #tpu.memory_space<vmem>>, vector<128x256xbf16>,
    } else {
    }
    return
  }
  func.func @transform_0(%arg0: i32, %arg1: i32, %arg2: memref<2xi32, #tpu.memory_space<smem>>) -> (i32, i32) {
    %0 = arith.index_cast %arg0 : i32 to index
    %1 = memref.load %arg2[%0] : memref<2xi32, #tpu.memory_space<smem>>
    %2 = arith.addi %1, %arg1 : i32
    %c0_i32 = arith.constant 0 : i32
    return %arg0, %2 : i32, i32
  }
  func.func @transform_1(%arg0: i32, %arg1: i32, %arg2: memref<2xi32, #tpu.memory_space<smem>>) -> (i32, i32) {
    %0 = arith.index_cast %arg0 : i32 to index
    %1 = memref.load %arg2[%0] : memref<2xi32, #tpu.memory_space<smem>>
    %2 = arith.addi %1, %arg1 : i32
    %c0_i32 = arith.constant 0 : i32
    %c0_i32_0 = arith.constant 0 : i32
    return %2, %c0_i32 : i32, i32
  }
  func.func @transform_2(%arg0: i32, %arg1: i32, %arg2: memref<2xi32, #tpu.memory_space<smem>>) -> (i32, i32) {
    %c0_i32 = arith.constant 0 : i32
    %c0_i32_0 = arith.constant 0 : i32
    %c0_i32_1 = arith.constant 0 : i32
    return %c0_i32, %c0_i32_0 : i32, i32
  }
  func.func @transform_3(%arg0: i32, %arg1: i32, %arg2: memref<2xi32, #tpu.memory_space<smem>>) -> (i32, i32) {
    %c0_i32 = arith.constant 0 : i32
    %c0_i32_0 = arith.constant 0 : i32
    %c0_i32_1 = arith.constant 0 : i32
    return %c0_i32, %c0_i32_0 : i32, i32
  }
  func.func @transform_4(%arg0: i32, %arg1: i32, %arg2: memref<2xi32, #tpu.memory_space<smem>>) -> (i32, i32) {
    %c0_i32 = arith.constant 0 : i32
    %c0_i32_0 = arith.constant 0 : i32
    return %arg0, %c0_i32 : i32, i32
  }
  func.func @transform_5(%arg0: i32, %arg1: i32, %arg2: memref<2xi32, #tpu.memory_space<smem>>) -> (i32, i32) {
    %c0_i32 = arith.constant 0 : i32
    %c0_i32_0 = arith.constant 0 : i32
    return %arg0, %c0_i32 : i32, i32
  }
}

</mosaic_0001>

<bundles_post_ra>
// kernel: tpu_custom_call.1
= control target key start
LH: loop header
LB: loop body
LE: loop exit
PB: predicated region body
PF: predicated region fallthrough
CT: control target
= control target key end

     0   :  { %s2220_s21 = smov [#allocation4]   ;;  %s2812_s0 = inlined_call_operand.hbm [shape: s32[2], index: 0, kind: input, shape index: {}]   ;;  %s2813_s1 = inlined_call_operand.hbm [shape: bf16[256,256], index: 1, kind: input, shape index: {}]   ;;  %s2814_s2 = inlined_call_operand.hbm [shape: bf16[256,128], index: 2, kind: input, shape index: {}]   ;;  %s2815_s3 = inlined_call_operand.vmem [shape: f32[1,128], index: 3, kind: input, shape index: {}]   ;;  %s2816_s4 = inlined_call_operand.hbm [shape: bf16[128,512], index: 4, kind: input, shape index: {}]   ;;  %s2817_s5 = inlined_call_operand.hbm [shape: bf16[256,256], index: 5, kind: output, shape index: {0}]   ;;  %s2818_s6 = inlined_call_operand.hbm [shape: bf16[256,256], index: 6, kind: output, shape index: {1}]  }
   0x1   :  { %2835 = sst [smem:[#allocation32_spill]] %s2816_s4 }
   0x2   :  { %2836 = sst [smem:[#allocation33_spill]] %s2817_s5 }
   0x3   :  { %2837 = sst [smem:[#allocation34_spill]] %s2818_s6 }
   0x4   :  { %13 = dma.hbm_to_smem %s2812_s0, 16, %s2220_s21, [#allocation3] }
   0x5   :  { %2150 = dma.done.wait [#allocation3], 16 }
   0x6   :  { %2151 = vsyncadd [#allocation3], 4294967280 }
   0x7   :  { %15 = sfence }
   0x8   :  { %16 = vsyncpa [#allocation6], 0 }
   0x9   :  { %18 = vsyncpa [#allocation6 + $0x1], 0 }
   0xa   :  { %19 = vsyncpa [#allocation9], 0 }
   0xb   :  { %21 = vsyncpa [#allocation9 + $0x1], 0 }
   0xc   :  { %22 = vsyncpa [#allocation7], 0 }
   0xd   :  { %24 = vsyncpa [#allocation7 + $0x1], 0 }
   0xe   :  { %25 = vsyncpa [#allocation13], 0 }
   0xf   :  { %27 = vsyncpa [#allocation13 + $0x1], 0  ;;  %s2272_s24 = smov 0   ;;  %s2274_s25 = smov 0  }
  0x10   :  { %s2276_s26 = smov 0   ;;  %s2278_s27 = smov 0  }
  0x11   :  { %s2280_s0 = smov 0   ;;  %s2282_s28 = smov 0  }
  0x12   :  { %s2284_s29 = smov 0   ;;  %s2286_s30 = smov 0  }
  0x13   :  { %s2288_s7 = smov 0   ;;  %s2290_s8 = smov 0  }
  0x14   :  { %s2292_s9 = smov 0   ;;  %s2294_s10 = smov 0  }
  0x15 LB: > { %2838 = sst [smem:[#allocation24_spill]] %s2174_s24  ;;  %s2329_s11 = sadd.s32 4294967295, %s2218_s10   ;;  %s2218_s10 = sphi %s2294_s10, %s33_s10   ;;  %s2214_s9 = sphi %s2292_s9, %s2887_s9   ;;  %s2210_s8 = sphi %s2290_s8, %s2886_s8   ;;  %s2206_s7 = sphi %s2288_s7, %s2885_s7   ;;  %s2202_s30 = sphi %s2286_s30, %s2884_s30   ;;  %s2198_s29 = sphi %s2284_s29, %s2883_s29   ;;  %s2194_s28 = sphi %s2282_s28, %s2882_s28   ;;  %s2190_s0 = sphi %s2280_s0, %s2881_s0   ;;  %s2186_s27 = sphi %s2278_s27, %s2880_s27   ;;  %s2182_s26 = sphi %s2276_s26, %s2875_s26   ;;  %s2178_s25 = sphi %s2274_s25, %s2879_s25   ;;  %s2174_s24 = sphi %s2272_s24, %s2878_s24  }
  0x16   : > { %2839 = sst [smem:[#allocation25_spill]] %s2182_s26  ;;  %s1538_s12 = sadd.s32 4294967294, %s2218_s10  }
  0x17   : > { %2840 = sst [smem:[#allocation26_spill]] %s2206_s7  ;;  %s45_s13 = sadd.s32 1, %s2214_s9 }
  0x18   : > { %2841 = sst [smem:[#allocation27_spill]] %s2210_s8  ;;  %p71_p0 = scmp.ne.s32.totalorder %s2202_s30, %s2198_s29 }
  0x19   : > { %p47_p1 = scmp.ge.s32.totalorder %s45_s13, 2  ;;  %p2830_p2 = scmp.eq.s32.totalorder %s2329_s11, 0 }
  0x1a   : > { %p101_p3 = scmp.ne.s32.totalorder %s2190_s0, %s2186_s27  ;;  %s156_s14 = sadd.s32 1, %s2182_s26 }
  0x1b   : > { %s2889_s13 = smov (%p47_p1, %s45_s13), 0  ;;  %p2341_p4 = por %p2830_p2, %p71_p0 }
  0x1c   : > { %p2347_p5 = por %p101_p3, %p2830_p2  ;;  %s2353_s17 = ssub.s32 %s2214_s9, %s2889_s13 }
  0x1d   : > { %s2842_s15 = scalar_select %p2341_p4, 1, 0 }
  0x1e   : > { %s2843_s16 = scalar_select %p2347_p5, 1, 0 }
  0x1f   : > { %p166_p6 = scmp.ne.s32.totalorder %s2182_s26, %s2178_s25  ;;  %p154_p7 = scmp.eq.s32.totalorder %s2353_s17, 0 }
  0x20   : > { %p167_p8 = scmp.eq.s32.totalorder %s2329_s11, 1  ;;  %p172_p9 = scmp.ne.s32.totalorder %s2178_s25, %s2174_s24 }
  0x21   : > { %p173_p10 = scmp.eq.s32.totalorder %s1538_s12, 1  ;;  %p1539_p13 = scmp.ge.s32.totalorder %s2218_s10, 1 }
  0x22   : > { %s2362_s18 = scalar_select %p154_p7, %s2182_s26, %s156_s14  }
  0x23   : > { %p2364_p11 = por %p167_p8, %p166_p6  ;;  %p2368_p12 = por %p173_p10, %p172_p9 }
  0x24   : > { %2844 = sst [smem:[#allocation28_spill]] %s2362_s18  ;;  %p206_p0 = scmp.lt.s32.totalorder %s2218_s10, 3 }
  0x25   : > { %s2845_s19 = scalar_select %p2364_p11, 1, 0 }
  0x26   : > { %s2847_s20 = scalar_select %p2368_p12, 1, 0 }
  0x27   : > { %2846 = sst [smem:[#allocation29_spill]] %s2845_s19  ;;  %p2374_p1 = pnand %p1539_p13, %p206_p0 }
  0x28   : > { %2848 = sst [smem:[#allocation30_spill]] %s2847_s20  ;;  %s2221_s22 = smov [#allocation10]  }
  0x29   : > { %s2849_s21 = scalar_select %p2374_p1, 1, 0 }
  0x2a   : > { %s221_s23 = sshll.u32 %s2221_s22, 4  ;;  %p1764_p3 = pneg %p2374_p1  ;;  %s222_s23 = int_to_ptr.vmem [resolvable:$true] %s221_s23 }
  0x2b   : > { %s49_s29 = sld [smem:[#allocation4 + %s2214_s9]]  ;;  %s1979_s14 = scalar_lea.vmem %s222_s23, 4096 }
  0x2c   : > { %p2383_p7 = pnand %p1764_p3, %p2830_p2  ;;  %s51_s12 = sld [smem:[#allocation4 + %s2889_s13]] }
  0x2d   : > { %p1980_p9 = scmp.ne.s32.totalorder %s222_s23, %s1979_s14  ;;  %p1987_p0 = scmp.lt.s32.totalorder %s222_s23, %s222_s23 }
  0x2e   : > { %p1970_p8 = pneg %p2383_p7  ;;  %p1988_p12 = scmp.lt.s32.totalorder %s1979_s14, %s1979_s14 }
  0x30   : > { %p1982_p10 = pnand %p1980_p9, %p1970_p8  ;;  %p1989_p11 = por %p1988_p12, %p1987_p0 }
  0x32   : > { %p1983_p13 = pneg %p1982_p10 }
  0x34   : > { %p1990_p5 = pnand %p1989_p11, %p1983_p13 }
  0x36   : > { %1993 = shalt.err (!%p1990_p5)
}
  0x37   : > { %s2222_s22 = smov 256   ;;  %s2223_s18 = smov 16  }
  0x38   : > { %s2851_s4 = sld [smem:[#allocation32_spill]]  ;;  %p65_p5 = scmp.ne.s32.totalorder %s2206_s7, %s2202_s30 }
  0x39   : > { %p66_p11 = scmp.eq.s32.totalorder %s2218_s10, 0  ;;  %s235_s20 = sand.u32 1, %s2206_s7  }
  0x3a   : > { %s1542_s24 = sshll.u32 %s235_s20, 6  ;;  %s54_s6 = ssub.s32 %s49_s29, %s51_s12 }
  0x3b   : > { %p67_p12 = por %p66_p11, %p65_p5  ;;  %s58_s5 = sadd.s32 1, %s2206_s7 }
  0x3c   : > { %s55_s19 = sor.u32 %s54_s6, %s2353_s17  ;;  %p2831_p3 = scmp.lt.s32.totalorder %s2218_s10, 2 }
  0x3d   : > { %p56_p8 = scmp.eq.s32.totalorder %s55_s19, 0  ;;  %s1646_s17 = sshll.u32 %s2214_s9, 5 }
  0x3e   : > { %1767 = dma.hbm_to_vmem [thread:$0]  (!%p2383_p7), %s2851_s4, 4096, %s222_s23, [#allocation9], %s2222_s22, %s2222_s22, %s2223_s18  }
  0x3f   : > { %s1750_s26 = scalar_select %p67_p12, [#allocation4], [#allocation14] }
  0x40   : > { %s2406_s18 = scalar_select %p56_p8, %s2206_s7, %s58_s5  }
  0x41   : > { %s1751_s23 = scalar_select %p67_p12, %s2214_s9, 0 }
  0x42   : > { %2852 = sst [smem:[#allocation31_spill]] %s2406_s18  ;;  %s2891_s26 = smov (!%p2831_p3, %s1750_s26), [#allocation16] }
  0x43   : > { %s2893_s23 = smov (!%p2831_p3, %s1751_s23), 0  ;;  %p2415_p7 = pnand %p2831_p3, %p67_p12 }
  0x44   : > { %s240_s6 = sld [smem:[%s2891_s26 + %s2893_s23]]  ;;  %s239_s29 = scalar_lea.vmem [#allocation5], %s1542_s24 }
  0x45   : > { %s250_s19 = sshll.u32 %s239_s29, 4  ;;  %s2421_s12 = sld [smem:[#allocation4 + %s2214_s9]]  ;;  %s2426_s19 = int_to_ptr.vmem [resolvable:$true] %s250_s19 }
  0x46   : > { %s2424_s5 = sld [smem:[#allocation4 + %s2889_s13]]  ;;  %p95_p9 = scmp.ne.s32.totalorder %s2194_s28, %s2190_s0 }
  0x47   : > { %s262_s4 = sand.u32 1, %s2194_s28   ;;  %s2442_s26 = scalar_lea.sflag [#allocation6], %s235_s20 }
  0x48   : > { %p2438_p10 = por %p95_p9, %p66_p11  ;;  %p1996_p0 = pneg %p2415_p7 }
  0x49   : > { %s1999_s18 = scalar_lea.hbm %s2813_s1, 4096 }
  0x4a   : > { %s247_s22 = sadd.s32 %s1646_s17, %s240_s6 }
  0x4b   : > { %s1545_s14 = sshll.u32 %s247_s22, 6 }
  0x4c   : > { %s2434_s8 = scalar_lea.hbm %s2813_s1, %s1545_s14 }
  0x4d   : > { %s2854_s24 = scalar_select %p2438_p10, 1, 0 }
  0x4e   : > { %s1994_s23 = scalar_lea.hbm %s2434_s8, 1024  ;;  %p2000_p8 = scmp.lt.s32.totalorder %s2434_s8, %s2813_s1 }
  0x4f   : > { %p1995_p13 = scmp.ne.s32.totalorder %s2434_s8, %s1994_s23  ;;  %p2001_p11 = scmp.lt.s32.totalorder %s1999_s18, %s1994_s23 }
  0x51   : > { %p1997_p5 = pnand %p1996_p0, %p1995_p13  ;;  %p2002_p9 = por %p2001_p11, %p2000_p8 }
  0x53   : > { %p1998_p12 = pneg %p1997_p5 }
  0x55   : > { %p2003_p6 = pnand %p2002_p9, %p1998_p12 }
  0x57   : > { %2006 = shalt.err (!%p2003_p6)
}
  0x58   : > { %s2007_s20 = scalar_lea.vmem %s2426_s19, 1024  ;;  %s2224_s22 = smov [#allocation5]  }
  0x59   : > { %p2008_p2 = scmp.ne.s32.totalorder %s2426_s19, %s2007_s20  ;;  %s2012_s14 = sshll.u32 %s2224_s22, 4  ;;  %s2013_s14 = int_to_ptr.vmem [resolvable:$false] %s2012_s14 }
  0x5a   : > { %s2014_s6 = scalar_lea.vmem %s2013_s14, 2048  ;;  %p2015_p5 = scmp.lt.s32.totalorder %s2426_s19, %s2013_s14 }
  0x5b   : > { %p2010_p3 = pnand %p2008_p2, %p1996_p0  ;;  %p2016_p4 = scmp.lt.s32.totalorder %s2014_s6, %s2007_s20 }
  0x5d   : > { %p2011_p13 = pneg %p2010_p3  ;;  %p2017_p1 = por %p2016_p4, %p2015_p5 }
  0x5f   : > { %p2018_p10 = pnand %p2017_p1, %p2011_p13 }
  0x61   : > { %2021 = shalt.err (!%p2018_p10)
}
  0x62   : > { %s2225_s23 = smov 128   ;;  %s2226_s7 = smov 64  }
  0x63   : > { %s2227_s18 = smov 4   ;;  %s85_s17 = ssub.s32 %s2421_s12, %s2424_s5 }
  0x64   : > { %1773 = dma.hbm_to_vmem [thread:$0]  (!%p2415_p7), %s2434_s8, 1024, %s2426_s19, %s2442_s26, %s2225_s23, %s2226_s7, %s2227_s18  }
  0x65   : > { %s88_s29 = sadd.s32 1, %s2194_s28  ;;  %p86_p2 = scmp.eq.s32.totalorder %s85_s17, 0 }
  0x66   : > { %s1546_s20 = sshll.u32 %s262_s4, 6  ;;  %p2855_p4 = scmp.ne.s32.totalorder %s2854_s24, 0 }
  0x67   : > { %s2473_s14 = scalar_select %p86_p2, %s2194_s28, %s88_s29  }
  0x68   : > { %s1753_s22 = scalar_select %p2855_p4, [#allocation4], [#allocation15] }
  0x69   : > { %s1754_s6 = scalar_select %p2855_p4, %s2214_s9, 0 }
  0x6a   : > { %p2856_p1 = scmp.lt.s32.totalorder %s2218_s10, 2  ;;  %s260_s19 = sand.u32 1, %s2218_s10  }
  0x6b   : > { %s264_s4 = scalar_lea.vmem [#allocation8], %s1546_s20  ;;  %s2498_s24 = scalar_lea.sflag [#allocation9], %s260_s19 }
  0x6c   : > { %s2895_s22 = smov (!%p2856_p1, %s1753_s22), [#allocation17]  ;;  %p2857_p6 = pmov %p2856_p1 }
  0x6d   : > { %p2858_p3 = pmov %p2856_p1  ;;  %s273_s12 = sshll.u32 %s264_s4, 4  ;;  %s2491_s12 = int_to_ptr.vmem [resolvable:$true] %s273_s12 }
  0x6e   : > { %s2897_s6 = smov (!%p2857_p6, %s1754_s6), 0 }
  0x6f   : > { %p2486_p10 = pnand %p2858_p3, %p2855_p4  ;;  %s265_s8 = sld [smem:[%s2895_s22 + %s2897_s6]] }
  0x70   : > { %s2027_s6 = scalar_lea.hbm %s2814_s2, 2048 }
  0x71   : > { %p2024_p0 = pneg %p2486_p10 }
  0x75   : > { %s1647_s5 = sshll.u32 %s265_s8, 10 }
  0x76   : > { %s2496_s17 = scalar_lea.hbm %s2814_s2, %s1647_s5 }
  0x77   : > { %s2022_s29 = scalar_lea.hbm %s2496_s17, 1024  ;;  %p2028_p11 = scmp.lt.s32.totalorder %s2496_s17, %s2814_s2 }
  0x78   : > { %p2023_p7 = scmp.ne.s32.totalorder %s2496_s17, %s2022_s29  ;;  %p2029_p9 = scmp.lt.s32.totalorder %s2027_s6, %s2022_s29 }
  0x7a   : > { %p2025_p12 = pnand %p2024_p0, %p2023_p7  ;;  %p2030_p13 = por %p2029_p9, %p2028_p11 }
  0x7c   : > { %p2026_p8 = pneg %p2025_p12 }
  0x7e   : > { %p2031_p5 = pnand %p2030_p13, %p2026_p8 }
  0x80   : > { %2034 = shalt.err (!%p2031_p5)
}
  0x81   : > { %s2035_s19 = scalar_lea.vmem %s2491_s12, 1024  ;;  %s2228_s5 = smov [#allocation8]  }
  0x82   : > { %p2036_p2 = scmp.ne.s32.totalorder %s2491_s12, %s2035_s19  ;;  %s2040_s26 = sshll.u32 %s2228_s5, 4  ;;  %s2041_s26 = int_to_ptr.vmem [resolvable:$false] %s2040_s26 }
  0x83   : > { %s2042_s23 = scalar_lea.vmem %s2041_s26, 2048  ;;  %p2043_p6 = scmp.lt.s32.totalorder %s2491_s12, %s2041_s26 }
  0x84   : > { %p2038_p4 = pnand %p2036_p2, %p2024_p0  ;;  %p2044_p3 = scmp.lt.s32.totalorder %s2042_s23, %s2035_s19 }
  0x86   : > { %p2039_p1 = pneg %p2038_p4  ;;  %p2045_p7 = por %p2044_p3, %p2043_p6 }
  0x88   : > { %p2046_p12 = pnand %p2045_p7, %p2039_p1 }
  0x8a   : > { %2049 = shalt.err (!%p2046_p12)
}
  0x8b   : > { %1778 = dma.hbm_to_vmem [thread:$0]  (!%p2486_p10), %s2496_s17, 1024, %s2491_s12, %s2498_s24, %s2226_s7, %s2226_s7, %s2227_s18  }
  0x8c   : > { %p2860_p0 = scmp.ne.s32.totalorder %s2849_s21, 0 }
  0x8d   : > { %s287_s29 = sand.u32 (!%p2860_p0), 1, %s2202_s30   ;;  %p2861_p8 = scmp.ne.s32.totalorder (!%p2860_p0), %s2842_s15, 0 }
  0x8e   : > { %285 = sbr.rel (%p2860_p0) target bundleno = 690 (0x2b2), region = 36  ;;  %s1550_s20 = sshll.u32 (!%p2860_p0), %s287_s29, 6 }
  0x8f   : > { %s288_s22 = scalar_lea.sflag (!%p2860_p0), [#allocation6], %s287_s29  ;;  %s2525_s6 = scalar_lea.vmem (!%p2860_p0), [#allocation5], %s1550_s20 }
  0x93   : > { %2153 = dma.done.wait (%p2861_p8), %s288_s22, 1024  }
  0x94   : > { %2155 = vsyncadd (%p2861_p8), %s288_s22, 4294966272  ;;  %s296_s27 = sand.u32 1, %s2329_s11   ;;  %s298_s7 = sand.u32 1, %s2190_s0  }
  0x95   : > { %s1551_s18 = sshll.u32 %s298_s7, 6  ;;  %s297_s21 = scalar_lea.sflag [#allocation9], %s296_s27 }
  0x96   : > { %s2533_s12 = scalar_lea.vmem [#allocation8], %s1551_s18  ;;  %p2862_p10 = scmp.ne.s32.totalorder %s2843_s16, 0 }
  0x98   : > { %2157 = dma.done.wait (%p2862_p10), %s297_s21, 1024  }
  0x99   : > { %2159 = vsyncadd (%p2862_p10), %s297_s21, 4294966272  ;;  %p2863_p11 = scmp.eq.s32.totalorder %s2329_s11, 0 }
  0x9b   : > { %2161 = dma.done.wait (%p2863_p11), [#allocation9], 4096   ;;  %p2864_p9 = pmov %p2863_p11 }
  0x9c   : > { %v1896_v0 = vld [vmem:[%s2533_s12 + $0x38] sm:$0xff]   ;;  %v1897_v1 = vld [vmem:[%s2533_s12 + $0x30] sm:$0xff]   ;;  %v1898_v2 = vld [vmem:[%s2533_s12 + $0x28] sm:$0xff]   ;;  %v2229_v48 = vmov 0   ;;  %s2661_s16 = sand.u32 1, %s2178_s25   ;;  %s2865_s4 = sld [smem:[#allocation27_spill]] }
  0x9d   : > { %2163 = vsyncadd (%p2864_p9), [#allocation9], 4294963200  ;;  %1700 = vmatprep.subr.bf16.mxu0 %v1896_v0  ;;  %v1899_v3 = vld [vmem:[%s2533_s12 + $0x20] sm:$0xff]   ;;  %v1900_v5 = vld [vmem:[%s2533_s12 + $0x18] sm:$0xff]   ;;  %933 = vmatprep.mubr.bf16.mxu1 %v2229_v48  ;;  %s1553_s17 = sshll.u32 %s2661_s16, 7  ;;  %s2866_s19 = sld [smem:[#allocation29_spill]] }
  0x9e   : > { %1701 = vmatpush3.bf16.msra.mxu0 %v1896_v0  ;;  %v1904_v4 = vld [vmem:[%s2525_s6] sm:$0xff]   ;;  %v1901_v6 = vld [vmem:[%s2533_s12 + $0x10] sm:$0xff]   ;;  %v1902_v11 = vld [vmem:[%s2533_s12 + $0x8] sm:$0xff]   ;;  %s2664_s24 = scalar_lea.vmem [#allocation11], %s1553_s17  ;;  %s2667_s8 = scalar_lea.vmem [#allocation12], %s1553_s17 }
  0x9f   : > { %1702 = vmatprep.subr.bf16.mxu0 %v1897_v1  ;;  %1716 = vmatprep.mubr.bf16.mxu0 %v1904_v4  ;;  %v1912_v7 = vld [vmem:[#allocation10 + $0xe4] ss:$16 sps:$4 sm:$0xff]   ;;  %v1914_v8 = vld [vmem:[#allocation10 + $0xe0] ss:$16 sps:$4 sm:$0xff]   ;;  %v2552_v16 = vld [vmem:[#allocation10 + $0xec] ss:$16 sps:$4 sm:$0xff]  }
  0xa0   : > { %901 = vmatprep.subr.bf16.mxu1 %v1912_v7  ;;  %v1918_v9 = vld [vmem:[#allocation10 + $0xc4] ss:$16 sps:$4 sm:$0xff]   ;;  %v1920_v10 = vld [vmem:[#allocation10 + $0xc0] ss:$16 sps:$4 sm:$0xff]   ;;  %v1905_v18 = vld [vmem:[%s2525_s6 + $0x8] sm:$0xff]   ;;  %s1371_s26 = sshll.u32 %s2664_s24, 4  ;;  %s2704_s26 = int_to_ptr.vmem [resolvable:$true] %s1371_s26 }
  0xa1   : > { %902 = vmatpush1.bf16.msra.mxu1 %v1914_v8  ;;  %v1924_v12 = vld [vmem:[#allocation10 + $0xa4] ss:$16 sps:$4 sm:$0xff]   ;;  %v1926_v14 = vld [vmem:[#allocation10 + $0xa0] ss:$16 sps:$4 sm:$0xff]   ;;  %v2556_v21 = vld [vmem:[#allocation10 + $0xe8] ss:$16 sps:$4 sm:$0xff]  }
  0xa2   : > { %1703 = vmatpush3.bf16.msra.mxu0 %v1897_v1  ;;  %903 = vmatprep.subr.bf16.mxu1 %v1918_v9  ;;  %v1903_v13 = vld [vmem:[%s2533_s12] sm:$0xff]   ;;  %v1906_v20 = vld [vmem:[%s2525_s6 + $0x10] sm:$0xff]   ;;  %v2558_v22 = vld [vmem:[#allocation10 + $0xcc] ss:$16 sps:$4 sm:$0xff]   ;;  %s1681_s5 = sshll.u32 %s2865_s4, 11  ;;  %s2867_s20 = sld [smem:[#allocation33_spill]] }
  0xa3   : > { %1704 = vmatprep.subr.bf16.mxu0 %v1898_v2  ;;  %v1930_v15 = vld [vmem:[#allocation10 + $0x84] ss:$16 sps:$4 sm:$0xff]   ;;  %v1932_v17 = vld [vmem:[#allocation10 + $0x80] ss:$16 sps:$4 sm:$0xff]   ;;  %v2562_v24 = vld [vmem:[#allocation10 + $0xc8] ss:$16 sps:$4 sm:$0xff]  }
  0xa4   : > { %v1936_v19 = vld [vmem:[#allocation10 + $0x64] ss:$16 sps:$4 sm:$0xff]   ;;  %v1938_v23 = vld [vmem:[#allocation10 + $0x60] ss:$16 sps:$4 sm:$0xff]   ;;  %v2565_v25 = vld [vmem:[#allocation10 + $0xac] ss:$16 sps:$4 sm:$0xff]  }
  0xa5   : > { %904 = vmatpush1.bf16.msra.mxu1 %v1920_v10  ;;  %v1907_v26 = vld [vmem:[%s2525_s6 + $0x18] sm:$0xff]   ;;  %v1908_v27 = vld [vmem:[%s2525_s6 + $0x20] sm:$0xff]   ;;  %v1909_v32 = vld [vmem:[%s2525_s6 + $0x28] sm:$0xff]   ;;  %s2050_s27 = scalar_lea.vmem %s2704_s26, 2048  ;;  %p2868_p5 = scmp.ne.s32.totalorder %s2866_s19, 0 }
  0xa6   : > { %1705 = vmatpush3.bf16.msra.mxu0 %v1898_v2  ;;  %905 = vmatprep.subr.bf16.mxu1 %v1924_v12  ;;  %v2570_v28 = vld [vmem:[#allocation10 + $0xa8] ss:$16 sps:$4 sm:$0xff]   ;;  %v2573_v29 = vld [vmem:[#allocation10 + $0x8c] ss:$16 sps:$4 sm:$0xff]   ;;  %v1910_v33 = vld [vmem:[%s2525_s6 + $0x30] sm:$0xff]   ;;  %p2051_p13 = scmp.ne.s32.totalorder %s2704_s26, %s2050_s27  ;;  %s2230_s7 = smov [#allocation11]  }
  0xa7   : > { %1706 = vmatprep.subr.bf16.mxu0 %v1899_v3  ;;  %v2576_v30 = vld [vmem:[#allocation10 + $0x88] ss:$16 sps:$4 sm:$0xff]   ;;  %v2579_v31 = vld [vmem:[#allocation10 + $0x6c] ss:$16 sps:$4 sm:$0xff]   ;;  %v1942_v36 = vld [vmem:[#allocation10 + $0x44] ss:$16 sps:$4 sm:$0xff]  }
  0xa8   : > { %v2584_v34 = vld [vmem:[#allocation10 + $0x68] ss:$16 sps:$4 sm:$0xff]   ;;  %v2589_v37 = vld [vmem:[#allocation10 + $0x4c] ss:$16 sps:$4 sm:$0xff]   ;;  %v1944_v38 = vld [vmem:[#allocation10 + $0x40] ss:$16 sps:$4 sm:$0xff]   ;;  %s2702_s22 = scalar_lea.hbm %s2867_s20, %s1681_s5  ;;  %p2052_p2 = pnand %p2051_p13, %p2868_p5 }
  0xa9   : > { %906 = vmatpush1.bf16.msra.mxu1 %v1926_v14  ;;  %v1911_v35 = vld [vmem:[%s2525_s6 + $0x38] sm:$0xff]   ;;  %v1948_v40 = vld [vmem:[#allocation10 + $0x24] ss:$16 sps:$4 sm:$0xff]   ;;  %v1950_v42 = vld [vmem:[#allocation10 + $0x20] ss:$16 sps:$4 sm:$0xff]   ;;  %s1352_s6 = scalar_lea.sflag [#allocation7], %s2661_s16 }
  0xaa   : > { %1707 = vmatpush3.bf16.msra.mxu0 %v1899_v3  ;;  %907 = vmatprep.subr.bf16.mxu1 %v1930_v15  ;;  %v2591_v39 = vld [vmem:[#allocation10 + $0x48] ss:$16 sps:$4 sm:$0xff]   ;;  %v2595_v41 = vld [vmem:[#allocation10 + $0x2c] ss:$16 sps:$4 sm:$0xff]   ;;  %v1954_v44 = vld [vmem:[#allocation10 + $0x4] ss:$16 sps:$4 sm:$0xff]   ;;  %p2053_p4 = pneg %p2052_p2 }
  0xab   : > { %1708 = vmatprep.subr.bf16.mxu0 %v1900_v5  ;;  %v2597_v43 = vld [vmem:[#allocation10 + $0x28] ss:$16 sps:$4 sm:$0xff]   ;;  %v2601_v45 = vld [vmem:[#allocation10 + $0xc] ss:$16 sps:$4 sm:$0xff]   ;;  %v1956_v46 = vld [vmem:[#allocation10] ss:$16 sps:$4 sm:$0xff]  }
  0xac   : > { %v2603_v47 = vld [vmem:[#allocation10 + $0x8] ss:$16 sps:$4 sm:$0xff]   ;;  %v2613_v51 = vld [vmem:[%s2815_s3] ss:$0 sm:$0xff]  ;;  %s2054_s18 = sshll.u32 %s2230_s7, 4  ;;  %s2055_s18 = int_to_ptr.vmem [resolvable:$false] %s2054_s18 }
  0xad   : > { %908 = vmatpush1.bf16.msra.mxu1 %v1932_v17  ;;  %s2056_s21 = scalar_lea.vmem %s2055_s18, 4096  ;;  %p2057_p1 = scmp.lt.s32.totalorder %s2704_s26, %s2055_s18 }
  0xae   : > { %1709 = vmatpush3.bf16.msra.mxu0 %v1900_v5  ;;  %909 = vmatprep.subr.bf16.mxu1 %v1936_v19  ;;  %p2058_p6 = scmp.lt.s32.totalorder %s2056_s21, %s2050_s27 }
  0xaf   : > { %1710 = vmatprep.subr.bf16.mxu0 %v1901_v6 }
  0xb0   : > { %p2059_p3 = por %p2058_p6, %p2057_p1 }
  0xb1   : > { %910 = vmatpush1.bf16.msra.mxu1 %v1938_v23 }
  0xb2   : > { %1711 = vmatpush3.bf16.msra.mxu0 %v1901_v6  ;;  %911 = vmatprep.subr.bf16.mxu1 %v1942_v36  ;;  %p2060_p7 = pnand %p2059_p3, %p2053_p4 }
  0xb3   : > { %1712 = vmatprep.subr.bf16.mxu0 %v1902_v11 }
  0xb5   : > { %912 = vmatpush1.bf16.msra.mxu1 %v1944_v38 }
  0xb6   : > { %1713 = vmatpush3.bf16.msra.mxu0 %v1902_v11  ;;  %913 = vmatprep.subr.bf16.mxu1 %v1948_v40 }
  0xb7   : > { %1714 = vmatprep.subr.bf16.mxu0 %v1903_v13 }
  0xb9   : > { %914 = vmatpush1.bf16.msra.mxu1 %v1950_v42 }
  0xba   : > { %1715 = vmatpush3.bf16.msra.mxu0 %v1903_v13  ;;  %915 = vmatprep.subr.bf16.mxu1 %v1954_v44 }
  0xbb   : > { %1014 = vmatprep.subr.bf16.mxu0 %v2552_v16 }
  0xbd   : > { %1717 = vmatmul.mubr.bf16.vlgmr.msra.gmra.mxu0 %v1905_v18  ;;  %916 = vmatpush1.bf16.msra.mxu1 %v1956_v46 }
  0xbe   : > { %1720 = vmatprep.mubr.bf16.mxu0 %v1906_v20  ;;  %1015 = vmatpush1.bf16.msra.mxu0 %v2556_v21 }
  0xbf   : > { %1016 = vmatprep.subr.bf16.mxu0 %v2558_v22  ;;  %1732 = vmatprep.subr.bf16.mxu1 %v2552_v16 }
  0xc2   : > { %1017 = vmatpush1.bf16.msra.mxu0 %v2562_v24 }
  0xc3   : > { %1018 = vmatprep.subr.bf16.mxu0 %v2565_v25 }
  0xc5   : > { %1721 = vmatmul.mubr.bf16.gmra.mxu0 %v1907_v26 }
  0xc6   : > { %1724 = vmatprep.mubr.bf16.mxu0 %v1908_v27  ;;  %1019 = vmatpush1.bf16.msra.mxu0 %v2570_v28 }
  0xc7   : > { %1020 = vmatprep.subr.bf16.mxu0 %v2573_v29 }
  0xca   : > { %1021 = vmatpush1.bf16.msra.mxu0 %v2576_v30 }
  0xcb   : > { %1022 = vmatprep.subr.bf16.mxu0 %v2579_v31 }
  0xcd   : > { %1725 = vmatmul.mubr.bf16.gmra.mxu0 %v1909_v32 }
  0xce   : > { %1728 = vmatprep.mubr.bf16.mxu0 %v1910_v33  ;;  %1023 = vmatpush1.bf16.msra.mxu0 %v2584_v34 }
  0xcf   : > { %1024 = vmatprep.subr.bf16.mxu0 %v2589_v37 }
  0xd2   : > { %1025 = vmatpush1.bf16.msra.mxu0 %v2591_v39 }
  0xd3   : > { %1026 = vmatprep.subr.bf16.mxu0 %v2595_v41 }
  0xd5   : > { %1729 = vmatmul.mubr.bf16.gmra.mxu0 %v1911_v35 }
  0xd6   : > { %1027 = vmatpush1.bf16.msra.mxu0 %v2597_v43  ;;  %1046 = vmatprep.mubr.bf16.mxu0 %v2229_v48 }
  0xd7   : > { %1028 = vmatprep.subr.bf16.mxu0 %v2601_v45 }
  0xda   : > { %1029 = vmatpush1.bf16.msra.mxu0 %v2603_v47 }
 0x17d   : > { %v1718_v49 = vpop.f32.mrf.mxu0 }
 0x17e   : > { %v671_v63 = vadd.f32 %v1718_v49, %v2613_v51 }
 0x17f   : > { %v548_v50 = vpop.f32.mrf.mxu0 }
 0x180   : > { %v669_v53 = vadd.f32 %v2613_v51, %v548_v50  ;;  %v687_v2 = vmax.f32 %v671_v63, 0.0 }
 0x181   : > { %v1719_v52 = vpop.f32.mrf.mxu0 }
 0x182   : > { %v685_v57 = vmax.f32 %v669_v53, 0.0  ;;  %v672_v60 = vadd.f32 %v1719_v52, %v2613_v51 }
 0x183   : > { %v551_v54 = vpop.f32.mrf.mxu0 }
 0x184   : > { %v670_v55 = vadd.f32 %v2613_v51, %v551_v54  ;;  %v688_v0 = vmax.f32 %v672_v60, 0.0 }
 0x185   : > { %v1722_v56 = vpop.f32.mrf.mxu0 }
 0x186   : > { %v686_v58 = vmax.f32 %v670_v55, 0.0  ;;  %v702_v3 = vpack.c.bf16 %v688_v0, %v687_v2  ;;  %v675_v10 = vadd.f32 %v1722_v56, %v2613_v51 }
 0x187   : > { %v564_v59 = vpop.f32.mrf.mxu0 }
 0x188   : > { %v701_v61 = vpack.c.bf16 %v686_v58, %v685_v57  ;;  %v673_v4 = vadd.f32 %v2613_v51, %v564_v59  ;;  %v691_v14 = vmax.f32 %v675_v10, 0.0 }
 0x189   : > { %v1723_v62 = vpop.f32.mrf.mxu0 }
 0x18a   : > { %934 = vmatmul.mubr.bf16.vlgmr.msra.gmra.mxu1 %v701_v61  ;;  %1047 = vmatmul.mubr.bf16.vlgmr.msra.gmra.mxu0 %v701_v61  ;;  %v689_v7 = vmax.f32 %v673_v4, 0.0  ;;  %v676_v11 = vadd.f32 %v1723_v62, %v2613_v51 }
 0x18b   : > { %1740 = vmatpush1.bf16.msra.mxu1 %v2556_v21  ;;  %943 = vmatprep.mubr.bf16.mxu1 %v2229_v48  ;;  %v567_v1 = vpop.f32.mrf.mxu0 }
 0x18c   : > { %1733 = vmatprep.subr.bf16.mxu1 %v2558_v22  ;;  %1056 = vmatprep.mubr.bf16.mxu0 %v2229_v48  ;;  %v674_v5 = vadd.f32 %v2613_v51, %v567_v1  ;;  %v692_v15 = vmax.f32 %v676_v11, 0.0 }
 0x18d   : > { %v1726_v6 = vpop.f32.mrf.mxu0 }
 0x18e   : > { %v690_v8 = vmax.f32 %v674_v5, 0.0  ;;  %v704_v17 = vpack.c.bf16 %v692_v15, %v691_v14 }
 0x18f   : > { %1741 = vmatpush1.bf16.msra.mxu1 %v2562_v24  ;;  %v580_v9 = vpop.f32.mrf.mxu0  ;;  %v679_v24 = vadd.f32 %v1726_v6, %v2613_v51 }
 0x190   : > { %1734 = vmatprep.subr.bf16.mxu1 %v2565_v25  ;;  %v703_v12 = vpack.c.bf16 %v690_v8, %v689_v7  ;;  %v677_v18 = vadd.f32 %v2613_v51, %v580_v9 }
 0x191   : > { %v1727_v13 = vpop.f32.mrf.mxu0 }
 0x192   : > { %944 = vmatmul.mubr.bf16.gmra.mxu1 %v702_v3  ;;  %1057 = vmatmul.mubr.bf16.gmra.mxu0 %v702_v3  ;;  %v693_v21 = vmax.f32 %v677_v18, 0.0  ;;  %v680_v25 = vadd.f32 %v1727_v13, %v2613_v51 }
 0x193   : > { %953 = vmatprep.mubr.bf16.mxu1 %v2229_v48  ;;  %1066 = vmatprep.mubr.bf16.mxu0 %v2229_v48  ;;  %v583_v16 = vpop.f32.mrf.mxu0 }
 0x194   : > { %1742 = vmatpush1.bf16.msra.mxu1 %v2570_v28  ;;  %v678_v19 = vadd.f32 %v2613_v51, %v583_v16  ;;  %v695_v28 = vmax.f32 %v679_v24, 0.0 }
 0x195   : > { %1735 = vmatprep.subr.bf16.mxu1 %v2573_v29  ;;  %v1730_v20 = vpop.f32.mrf.mxu0  ;;  %v696_v29 = vmax.f32 %v680_v25, 0.0 }
 0x196   : > { %v694_v22 = vmax.f32 %v678_v19, 0.0  ;;  %v683_v36 = vadd.f32 %v1730_v20, %v2613_v51 }
 0x197   : > { %v596_v23 = vpop.f32.mrf.mxu0 }
 0x198   : > { %1743 = vmatpush1.bf16.msra.mxu1 %v2576_v30  ;;  %v705_v26 = vpack.c.bf16 %v694_v22, %v693_v21  ;;  %v681_v32 = vadd.f32 %v2613_v51, %v596_v23 }
 0x199   : > { %1736 = vmatprep.subr.bf16.mxu1 %v2579_v31  ;;  %v1731_v27 = vpop.f32.mrf.mxu0  ;;  %v706_v31 = vpack.c.bf16 %v696_v29, %v695_v28 }
 0x19a   : > { %954 = vmatmul.mubr.bf16.gmra.mxu1 %v703_v12  ;;  %1067 = vmatmul.mubr.bf16.gmra.mxu0 %v703_v12 }
 0x19b   : > { %963 = vmatprep.mubr.bf16.mxu1 %v2229_v48  ;;  %1076 = vmatprep.mubr.bf16.mxu0 %v2229_v48  ;;  %v599_v30 = vpop.f32.mrf.mxu0 }
 0x19c   : > { %1744 = vmatpush1.bf16.msra.mxu1 %v2584_v34  ;;  %v682_v33 = vadd.f32 %v2613_v51, %v599_v30  ;;  %v697_v34 = vmax.f32 %v681_v32, 0.0 }
 0x19d   : > { %1737 = vmatprep.subr.bf16.mxu1 %v2589_v37  ;;  %v684_v37 = vadd.f32 %v1731_v27, %v2613_v51 }
 0x19e   : > { %v698_v35 = vmax.f32 %v682_v33, 0.0 }
 0x19f   : > { %v700_v40 = vmax.f32 %v684_v37, 0.0 }
 0x1a0   : > { %1745 = vmatpush1.bf16.msra.mxu1 %v2591_v39  ;;  %v707_v38 = vpack.c.bf16 %v698_v35, %v697_v34  ;;  %v699_v39 = vmax.f32 %v683_v36, 0.0 }
 0x1a1   : > { %1738 = vmatprep.subr.bf16.mxu1 %v2595_v41 }
 0x1a2   : > { %964 = vmatmul.mubr.bf16.gmra.mxu1 %v704_v17  ;;  %1077 = vmatmul.mubr.bf16.gmra.mxu0 %v704_v17  ;;  %v708_v41 = vpack.c.bf16 %v700_v40, %v699_v39 }
 0x1a3   : > { %973 = vmatprep.mubr.bf16.mxu1 %v2229_v48  ;;  %1086 = vmatprep.mubr.bf16.mxu0 %v2229_v48 }
 0x1a4   : > { %1746 = vmatpush1.bf16.msra.mxu1 %v2597_v43 }
 0x1a5   : > { %1739 = vmatprep.subr.bf16.mxu1 %v2601_v45 }
 0x1a8   : > { %1747 = vmatpush1.bf16.msra.mxu1 %v2603_v47 }
 0x1aa   : > { %974 = vmatmul.mubr.bf16.gmra.mxu1 %v705_v26  ;;  %1087 = vmatmul.mubr.bf16.gmra.mxu0 %v705_v26 }
 0x1ab   : > { %983 = vmatprep.mubr.bf16.mxu1 %v2229_v48  ;;  %1096 = vmatprep.mubr.bf16.mxu0 %v2229_v48 }
 0x1b2   : > { %984 = vmatmul.mubr.bf16.gmra.mxu1 %v706_v31  ;;  %1097 = vmatmul.mubr.bf16.gmra.mxu0 %v706_v31 }
 0x1b3   : > { %993 = vmatprep.mubr.bf16.mxu1 %v2229_v48 }
 0x1ba   : > { %994 = vmatmul.mubr.bf16.gmra.mxu1 %v707_v38 }
 0x1bb   : > { %1003 = vmatprep.mubr.bf16.mxu1 %v2229_v48 }
 0x1c2   : > { %1004 = vmatmul.mubr.bf16.gmra.mxu1 %v708_v41 }
 0x1c3   : > { %1106 = vmatprep.mubr.bf16.mxu1 %v2229_v48 }
 0x1ca   : > { %1107 = vmatmul.mubr.bf16.vlgmr.msra.gmra.mxu1 %v707_v38 }
 0x1cb   : > { %1116 = vmatprep.mubr.bf16.mxu1 %v2229_v48 }
 0x1d2   : > { %1117 = vmatmul.mubr.bf16.gmra.mxu1 %v708_v41 }
 0x24a   : > { %v935_v42 = vpop.f32.mrf.mxu1  ;;  %v1048_v43 = vpop.f32.mrf.mxu0 }
 0x24c   : > { %v937_v44 = vpop.f32.mrf.mxu1  ;;  %v1050_v45 = vpop.f32.mrf.mxu0 }
 0x24d   : > { %v1648_v46 = vpack.c.bf16 %v937_v44, %v935_v42  ;;  %v1664_v47 = vpack.c.bf16 %v1050_v45, %v1048_v43 }
 0x24e   : > { %v939_v49 = vpop.f32.mrf.mxu1  ;;  %v1052_v50 = vpop.f32.mrf.mxu0 }
 0x24f   : > { %1223 = vst [vmem:[%s2664_s24] sm:$0xff] %v1648_v46  ;;  %1335 = vst [vmem:[%s2667_s8] sm:$0xff] %v1664_v47 }
 0x250   : > { %v941_v48 = vpop.f32.mrf.mxu1  ;;  %v1054_v51 = vpop.f32.mrf.mxu0 }
 0x251   : > { %v1649_v52 = vpack.c.bf16 %v941_v48, %v939_v49  ;;  %v1665_v53 = vpack.c.bf16 %v1054_v51, %v1052_v50 }
 0x252   : > { %v945_v54 = vpop.f32.mrf.mxu1  ;;  %v1058_v55 = vpop.f32.mrf.mxu0 }
 0x253   : > { %1224 = vst [vmem:[%s2664_s24 + $0x8] sm:$0xff] %v1649_v52  ;;  %1336 = vst [vmem:[%s2667_s8 + $0x8] sm:$0xff] %v1665_v53 }
 0x254   : > { %v947_v56 = vpop.f32.mrf.mxu1  ;;  %v1060_v57 = vpop.f32.mrf.mxu0 }
 0x255   : > { %v1650_v58 = vpack.c.bf16 %v947_v56, %v945_v54  ;;  %v1666_v59 = vpack.c.bf16 %v1060_v57, %v1058_v55 }
 0x256   : > { %v949_v60 = vpop.f32.mrf.mxu1  ;;  %v1062_v61 = vpop.f32.mrf.mxu0 }
 0x257   : > { %1225 = vst [vmem:[%s2664_s24 + $0x10] sm:$0xff] %v1650_v58  ;;  %1337 = vst [vmem:[%s2667_s8 + $0x10] sm:$0xff] %v1666_v59 }
 0x258   : > { %v951_v62 = vpop.f32.mrf.mxu1  ;;  %v1064_v63 = vpop.f32.mrf.mxu0 }
 0x259   : > { %v1651_v0 = vpack.c.bf16 %v951_v62, %v949_v60  ;;  %v1667_v1 = vpack.c.bf16 %v1064_v63, %v1062_v61 }
 0x25a   : > { %v955_v2 = vpop.f32.mrf.mxu1  ;;  %v1068_v3 = vpop.f32.mrf.mxu0 }
 0x25b   : > { %1226 = vst [vmem:[%s2664_s24 + $0x18] sm:$0xff] %v1651_v0  ;;  %1338 = vst [vmem:[%s2667_s8 + $0x18] sm:$0xff] %v1667_v1 }
 0x25c   : > { %v957_v4 = vpop.f32.mrf.mxu1  ;;  %v1070_v5 = vpop.f32.mrf.mxu0 }
 0x25d   : > { %v1652_v6 = vpack.c.bf16 %v957_v4, %v955_v2  ;;  %v1668_v7 = vpack.c.bf16 %v1070_v5, %v1068_v3 }
 0x25e   : > { %v959_v8 = vpop.f32.mrf.mxu1  ;;  %v1072_v9 = vpop.f32.mrf.mxu0 }
 0x25f   : > { %1227 = vst [vmem:[%s2664_s24 + $0x20] sm:$0xff] %v1652_v6  ;;  %1339 = vst [vmem:[%s2667_s8 + $0x20] sm:$0xff] %v1668_v7 }
 0x260   : > { %v961_v10 = vpop.f32.mrf.mxu1  ;;  %v1074_v11 = vpop.f32.mrf.mxu0 }
 0x261   : > { %v1653_v12 = vpack.c.bf16 %v961_v10, %v959_v8  ;;  %v1669_v13 = vpack.c.bf16 %v1074_v11, %v1072_v9 }
 0x262   : > { %v965_v14 = vpop.f32.mrf.mxu1  ;;  %v1078_v15 = vpop.f32.mrf.mxu0 }
 0x263   : > { %1228 = vst [vmem:[%s2664_s24 + $0x28] sm:$0xff] %v1653_v12  ;;  %1340 = vst [vmem:[%s2667_s8 + $0x28] sm:$0xff] %v1669_v13 }
 0x264   : > { %v967_v16 = vpop.f32.mrf.mxu1  ;;  %v1080_v17 = vpop.f32.mrf.mxu0 }
 0x265   : > { %v1654_v18 = vpack.c.bf16 %v967_v16, %v965_v14  ;;  %v1670_v19 = vpack.c.bf16 %v1080_v17, %v1078_v15 }
 0x266   : > { %v969_v20 = vpop.f32.mrf.mxu1  ;;  %v1082_v21 = vpop.f32.mrf.mxu0 }
 0x267   : > { %1229 = vst [vmem:[%s2664_s24 + $0x30] sm:$0xff] %v1654_v18  ;;  %1341 = vst [vmem:[%s2667_s8 + $0x30] sm:$0xff] %v1670_v19 }
 0x268   : > { %v971_v22 = vpop.f32.mrf.mxu1  ;;  %v1084_v23 = vpop.f32.mrf.mxu0 }
 0x269   : > { %v1655_v24 = vpack.c.bf16 %v971_v22, %v969_v20  ;;  %v1671_v25 = vpack.c.bf16 %v1084_v23, %v1082_v21 }
 0x26a   : > { %v975_v26 = vpop.f32.mrf.mxu1  ;;  %v1088_v27 = vpop.f32.mrf.mxu0 }
 0x26b   : > { %1230 = vst [vmem:[%s2664_s24 + $0x38] sm:$0xff] %v1655_v24  ;;  %1342 = vst [vmem:[%s2667_s8 + $0x38] sm:$0xff] %v1671_v25 }
 0x26c   : > { %v977_v28 = vpop.f32.mrf.mxu1  ;;  %v1090_v29 = vpop.f32.mrf.mxu0 }
 0x26d   : > { %v1656_v30 = vpack.c.bf16 %v977_v28, %v975_v26  ;;  %v1672_v31 = vpack.c.bf16 %v1090_v29, %v1088_v27 }
 0x26e   : > { %v979_v32 = vpop.f32.mrf.mxu1  ;;  %v1092_v33 = vpop.f32.mrf.mxu0 }
 0x26f   : > { %1231 = vst [vmem:[%s2664_s24 + $0x40] sm:$0xff] %v1656_v30  ;;  %1343 = vst [vmem:[%s2667_s8 + $0x40] sm:$0xff] %v1672_v31 }
 0x270   : > { %v981_v34 = vpop.f32.mrf.mxu1  ;;  %v1094_v35 = vpop.f32.mrf.mxu0 }
 0x271   : > { %v1657_v36 = vpack.c.bf16 %v981_v34, %v979_v32  ;;  %v1673_v37 = vpack.c.bf16 %v1094_v35, %v1092_v33 }
 0x272   : > { %v985_v38 = vpop.f32.mrf.mxu1  ;;  %v1098_v39 = vpop.f32.mrf.mxu0 }
 0x273   : > { %1232 = vst [vmem:[%s2664_s24 + $0x48] sm:$0xff] %v1657_v36  ;;  %1344 = vst [vmem:[%s2667_s8 + $0x48] sm:$0xff] %v1673_v37 }
 0x274   : > { %v987_v40 = vpop.f32.mrf.mxu1  ;;  %v1100_v41 = vpop.f32.mrf.mxu0 }
 0x275   : > { %v1658_v42 = vpack.c.bf16 %v987_v40, %v985_v38  ;;  %v1674_v43 = vpack.c.bf16 %v1100_v41, %v1098_v39 }
 0x276   : > { %v989_v44 = vpop.f32.mrf.mxu1  ;;  %v1102_v45 = vpop.f32.mrf.mxu0 }
 0x277   : > { %1233 = vst [vmem:[%s2664_s24 + $0x50] sm:$0xff] %v1658_v42  ;;  %1345 = vst [vmem:[%s2667_s8 + $0x50] sm:$0xff] %v1674_v43 }
 0x278   : > { %v991_v46 = vpop.f32.mrf.mxu1  ;;  %v1104_v47 = vpop.f32.mrf.mxu0 }
 0x279   : > { %v1659_v49 = vpack.c.bf16 %v991_v46, %v989_v44  ;;  %v1675_v50 = vpack.c.bf16 %v1104_v47, %v1102_v45 }
 0x27a   : > { %v995_v48 = vpop.f32.mrf.mxu1 }
 0x27b   : > { %1234 = vst [vmem:[%s2664_s24 + $0x58] sm:$0xff] %v1659_v49  ;;  %1346 = vst [vmem:[%s2667_s8 + $0x58] sm:$0xff] %v1675_v50 }
 0x27c   : > { %v997_v51 = vpop.f32.mrf.mxu1 }
 0x27d   : > { %v1660_v52 = vpack.c.bf16 %v997_v51, %v995_v48 }
 0x27e   : > { %v999_v53 = vpop.f32.mrf.mxu1 }
 0x27f   : > { %1235 = vst [vmem:[%s2664_s24 + $0x60] sm:$0xff] %v1660_v52 }
 0x280   : > { %v1001_v54 = vpop.f32.mrf.mxu1 }
 0x281   : > { %v1661_v55 = vpack.c.bf16 %v1001_v54, %v999_v53 }
 0x282   : > { %v1005_v56 = vpop.f32.mrf.mxu1 }
 0x283   : > { %1236 = vst [vmem:[%s2664_s24 + $0x68] sm:$0xff] %v1661_v55 }
 0x284   : > { %v1007_v57 = vpop.f32.mrf.mxu1 }
 0x285   : > { %v1662_v58 = vpack.c.bf16 %v1007_v57, %v1005_v56 }
 0x286   : > { %v1009_v59 = vpop.f32.mrf.mxu1 }
 0x287   : > { %1237 = vst [vmem:[%s2664_s24 + $0x70] sm:$0xff] %v1662_v58 }
 0x288   : > { %v1011_v60 = vpop.f32.mrf.mxu1 }
 0x289   : > { %v1663_v61 = vpack.c.bf16 %v1011_v60, %v1009_v59 }
 0x28a   : > { %v1108_v62 = vpop.f32.mrf.mxu1 }
 0x28b   : > { %1238 = vst [vmem:[%s2664_s24 + $0x78] sm:$0xff] %v1663_v61 }
 0x28c   : > { %v1110_v63 = vpop.f32.mrf.mxu1 }
 0x28d   : > { %2063 = shalt.err (!%p2060_p7)
}
 0x28e   : > { %s2064_s12 = scalar_lea.hbm %s2702_s22, 2048  ;;  %s2068_s17 = scalar_lea.hbm %s2867_s20, 4096 }
 0x28f   : > { %p2065_p12 = scmp.ne.s32.totalorder %s2702_s22, %s2064_s12  ;;  %p2069_p10 = scmp.lt.s32.totalorder %s2702_s22, %s2867_s20 }
 0x290   : > { %p2070_p11 = scmp.lt.s32.totalorder %s2068_s17, %s2064_s12 }
 0x291   : > { %p2066_p0 = pnand %p2065_p12, %p2868_p5 }
 0x292   : > { %p2071_p9 = por %p2070_p11, %p2069_p10 }
 0x293   : > { %p2067_p8 = pneg %p2066_p0 }
 0x295   : > { %p2072_p13 = pnand %p2071_p9, %p2067_p8 }
 0x297   : > { %2075 = shalt.err (!%p2072_p13)
}
 0x298   : > { %s2231_s29 = smov 128   ;;  %s2232_s27 = smov 8   ;;  %v1676_v0 = vpack.c.bf16 %v1110_v63, %v1108_v62  ;;  %v1112_v1 = vpop.f32.mrf.mxu1 }
 0x299   : > { %1760 = dma.vmem_to_hbm [thread:$0]  (%p2868_p5), %s2704_s26, 2048, %s2702_s22, %s1352_s6, %s2231_s29, %s2231_s29, %s2232_s27  }
 0x29a   : > { %1347 = vst [vmem:[%s2667_s8 + $0x60] sm:$0xff] %v1676_v0  ;;  %v1114_v2 = vpop.f32.mrf.mxu1  ;;  %s1388_s7 = sshll.u32 %s2667_s8, 4  ;;  %s2869_s22 = sld [smem:[#allocation34_spill]]  ;;  %s2744_s7 = int_to_ptr.vmem [resolvable:$true] %s1388_s7 }
 0x29b   : > { %v1677_v3 = vpack.c.bf16 %v1114_v2, %v1112_v1  ;;  %s1357_s21 = scalar_lea.sflag [#allocation13], %s2661_s16  ;;  %s2076_s12 = scalar_lea.vmem %s2744_s7, 2048 }
 0x29c   : > { %v1118_v4 = vpop.f32.mrf.mxu1  ;;  %p2077_p2 = scmp.ne.s32.totalorder %s2744_s7, %s2076_s12  ;;  %s2233_s11 = smov [#allocation12]  }
 0x29d   : > { %1348 = vst [vmem:[%s2667_s8 + $0x68] sm:$0xff] %v1677_v3  ;;  %s2080_s15 = sshll.u32 %s2233_s11, 4  ;;  %s2081_s15 = int_to_ptr.vmem [resolvable:$false] %s2080_s15 }
 0x29e   : > { %v1120_v5 = vpop.f32.mrf.mxu1  ;;  %p2078_p4 = pnand %p2077_p2, %p2868_p5  ;;  %s2082_s4 = scalar_lea.vmem %s2081_s15, 4096 }
 0x29f   : > { %v1678_v6 = vpack.c.bf16 %v1120_v5, %v1118_v4  ;;  %p2083_p6 = scmp.lt.s32.totalorder %s2744_s7, %s2081_s15  ;;  %p2084_p3 = scmp.lt.s32.totalorder %s2082_s4, %s2076_s12 }
 0x2a0   : > { %v1122_v7 = vpop.f32.mrf.mxu1  ;;  %s2742_s6 = scalar_lea.hbm %s2869_s22, %s1681_s5  ;;  %p2079_p1 = pneg %p2078_p4 }
 0x2a1   : > { %1349 = vst [vmem:[%s2667_s8 + $0x70] sm:$0xff] %v1678_v6  ;;  %p2085_p7 = por %p2084_p3, %p2083_p6 }
 0x2a2   : > { %v1124_v8 = vpop.f32.mrf.mxu1 }
 0x2a3   : > { %v1679_v9 = vpack.c.bf16 %v1124_v8, %v1122_v7  ;;  %p2086_p12 = pnand %p2085_p7, %p2079_p1 }
 0x2a5   : > { %1350 = vst [vmem:[%s2667_s8 + $0x78] sm:$0xff] %v1679_v9 }
 0x2a6   : > { %2089 = shalt.err (!%p2086_p12)
}
 0x2a7   : > { %s2090_s8 = scalar_lea.hbm %s2742_s6, 2048  ;;  %s2094_s17 = scalar_lea.hbm %s2869_s22, 4096 }
 0x2a8   : > { %p2091_p0 = scmp.ne.s32.totalorder %s2742_s6, %s2090_s8  ;;  %p2095_p11 = scmp.lt.s32.totalorder %s2742_s6, %s2869_s22 }
 0x2a9   : > { %p2096_p9 = scmp.lt.s32.totalorder %s2094_s17, %s2090_s8 }
 0x2aa   : > { %p2092_p8 = pnand %p2091_p0, %p2868_p5 }
 0x2ab   : > { %p2097_p13 = por %p2096_p9, %p2095_p11 }
 0x2ac   : > { %p2093_p10 = pneg %p2092_p8 }
 0x2ae   : > { %p2098_p2 = pnand %p2097_p13, %p2093_p10 }
 0x2b0   : > { %2101 = shalt.err (!%p2098_p2)
}
 0x2b1   : > { %1761 = dma.vmem_to_hbm [thread:$0]  (%p2868_p5), %s2744_s7, 2048, %s2742_s6, %s1357_s21, %s2231_s29, %s2231_s29, %s2232_s27  }
 0x2b2 PF: > { %s2870_s18 = sld [smem:[#allocation24_spill]]  ;;  %p2873_p1 = scmp.ge.s32.totalorder %s2218_s10, 2 }
 0x2b3   : > { %s2871_s26 = sld [smem:[#allocation30_spill]] }
 0x2b8   : > { %s1403_s12 = sand.u32 1, %s2870_s18  }
 0x2b9   : > { %p2872_p4 = scmp.ne.s32.totalorder %s2871_s26, 0  ;;  %s1404_s11 = scalar_lea.sflag [#allocation7], %s1403_s12 }
 0x2bb   : > { %p1780_p6 = pnand %p2873_p1, %p2872_p4 }
 0x2bd   : > { %p1781_p3 = pneg %p1780_p6 }
 0x2bf   : > { %2165 = dma.done.wait (%p1781_p3), %s1404_s11, 2048  }
 0x2c0   : > { %2167 = vsyncadd (%p1781_p3), %s1404_s11, 4294965248  ;;  %s1413_s15 = scalar_lea.sflag [#allocation13], %s1403_s12 }
 0x2c1   : > { %2169 = dma.done.wait (%p1781_p3), %s1413_s15, 2048  }
 0x2c2   : > { %2171 = vsyncadd (%p1781_p3), %s1413_s15, 4294965248  ;;  %s33_s10 = sadd.s32 1, %s2218_s10   ;;  %s2874_s19 = sld [smem:[#allocation25_spill]] }
 0x2c3   : > { %p30_p7 = scmp.ge.s32.totalorder %s33_s10, 4   ;;  %s2875_s26 = sld [smem:[#allocation28_spill]] }
 0x2c4   : > { %s2876_s7 = sld [smem:[#allocation26_spill]]  ;;  %s2878_s24 = smov %s2178_s25 }
 0x2c5   : > { %s2877_s6 = sld [smem:[#allocation31_spill]]  ;;  %s2880_s27 = smov %s2190_s0 }
 0x2c6   : > { %s2881_s0 = smov %s2194_s28  ;;  %s2882_s28 = smov %s2473_s14 }
 0x2c7   : > { %s2883_s29 = smov %s2202_s30  ;;  %s2886_s8 = smov %s2214_s9 }
 0x2c8   : > { %s2879_s25 = smov %s2874_s19  ;;  %s2887_s9 = smov %s2889_s13 }
 0x2c9   :  { %32 = sbr.rel (!%p30_p7) target bundleno = 21 (0x15), region = 123 }
 0x2ca   : > { %s2884_s30 = smov %s2876_s7 }
 0x2cb   : > { %s2885_s7 = smov %s2877_s6 }
 0x2ce   :  { %1418 = vsyncpa [#allocation6], 1 }
 0x2cf   :  { %1420 = vsyncpa [#allocation6 + $0x1], 1 }
 0x2d0   :  { %1421 = vsyncpa [#allocation9], 1 }
 0x2d1   :  { %1423 = vsyncpa [#allocation9 + $0x1], 1 }
 0x2d2   :  { %1424 = vsyncpa [#allocation7], 1 }
 0x2d3   :  { %1426 = vsyncpa [#allocation7 + $0x1], 1 }
 0x2d4   :  { %1427 = vsyncpa [#allocation13], 1 }
 0x2d5   :  { %1429 = vsyncpa [#allocation13 + $0x1], 1 }

</bundles_post_ra>
